<compile_context>
chip_gen: v5e
topology: v5e:2x2
jax: 0.10.0
libtpu: 0.0.40
codegen_flags: <defaults>
</compile_context>

<pallas_src>
import jax
import jax.numpy as jnp
from jax.experimental import pallas as pl
from jax.experimental.pallas import tpu as pltpu

IN_F, HID_F, OUT_F = 4, 3, 2
SPL = 128 // IN_F                    # samples packed per 128-lane row (= 32)
TARGET_ROWS = 4096                   # lane-rows per tile (131072 samples, ~2 MiB f32)
MIN_PALLAS_BATCH = 512               # below this, plain XLA beats a kernel launch
_TOL = dict(atol=1e-2, rtol=1e-2)    # slack for the MXU's f32 pass strategy (see main)


def _mlp_kernel(x_ref, w1b_ref, b1b_ref, w2b_ref, b2b_ref, o_ref):
    """One batch tile; 32 samples interleaved per 128-lane row.

    x_ref  : (TR, 128) VMEM   lane 4*s+f = feature f of sample s
    w1b_ref: (128, 96) VMEM   kron(I_32, fc1.weight^T), block-diagonal
    b1b_ref: (1, 96)   VMEM   fc1.bias tiled 32x
    w2b_ref: (96, 64)  VMEM   kron(I_32, fc2.weight^T), block-diagonal
    b2b_ref: (1, 64)   VMEM   fc2.bias tiled 32x
    o_ref  : (TR, 64)  VMEM   lane 2*s+i = output i of sample s
    """
    x = x_ref[...].astype(jnp.float32)                        # f32 accumulation path
    h = jnp.dot(x, w1b_ref[...], preferred_element_type=jnp.float32)
    h = jnp.maximum(h + b1b_ref[...], 0.0)                    # fused bias + ReLU
    y = jnp.dot(h, w2b_ref[...], preferred_element_type=jnp.float32)
    o_ref[...] = (y + b2b_ref[...]).astype(o_ref.dtype)       # single dense store


def _block_rows(num_rows):
    """Lane-rows per tile: as large as useful, but >=2 grid steps (v7x has 2 TCs)."""
    if num_rows <= 8:
        return num_rows                       # single full-array block
    half = -(-num_rows // 2)                  # ceil -> at least 2 grid steps
    rows = min(TARGET_ROWS, half)
    return -(-rows // 8) * 8                  # round up to a sublane multiple


def _dense_forward(x, w1, b1, w2, b2):
    """Plain-XLA path for tiny batches (launch overhead >> ~60 FLOPs of work)."""
    return jnp.maximum(x @ w1.T + b1, 0.0) @ w2.T + b2


@jax.jit
def mlp_forward(x, w1, b1, w2, b2):
    """fc2(relu(fc1(x))) for x: (B, 4) -> (B, 2)."""
    batch = x.shape[0]
    if batch < MIN_PALLAS_BATCH:
        return _dense_forward(x, w1, b1, w2, b2)

    # Pack 32 samples per 128-lane row.  For B % 32 == 0 this is a free contiguous
    # reshape: no pad, no transpose, no extra HBM pass.
    b_pad = -(-batch // SPL) * SPL
    if b_pad != batch:
        # TODO(synk): only the ragged tail needs padding; an aligned producer layout
        # would avoid this copy entirely.
        x = jnp.pad(x, ((0, b_pad - batch), (0, 0)))
    rows = b_pad // SPL
    x_lanes = x.reshape(rows, SPL * IN_F)                     # (rows, 128)

    # Lane-space (block-diagonal) weights: h[:, 3s+j] = sum_f x[:, 4s+f] * W1[j, f].
    f32 = jnp.float32
    eye = jnp.eye(SPL, dtype=f32)
    w1b = jnp.kron(eye, w1.T.astype(f32))                     # (128, 96)
    w2b = jnp.kron(eye, w2.T.astype(f32))                     # (96, 64)
    b1b = jnp.tile(b1.astype(f32), SPL).reshape(1, SPL * HID_F)
    b2b = jnp.tile(b2.astype(f32), SPL).reshape(1, SPL * OUT_F)

    tile_rows = _block_rows(rows)
    resident = lambda i: (0, 0)                               # fetched once, stays in VMEM

    y_lanes = pl.pallas_call(
        _mlp_kernel,
        out_shape=jax.ShapeDtypeStruct((rows, SPL * OUT_F), x.dtype),
        grid=(pl.cdiv(rows, tile_rows),),
        in_specs=[
            pl.BlockSpec((tile_rows, SPL * IN_F), lambda i: (i, 0)),
            pl.BlockSpec(w1b.shape, resident),
            pl.BlockSpec(b1b.shape, resident),
            pl.BlockSpec(w2b.shape, resident),
            pl.BlockSpec(b2b.shape, resident),
        ],
        out_specs=pl.BlockSpec((tile_rows, SPL * OUT_F), lambda i: (i, 0)),
        compiler_params=pltpu.CompilerParams(
            dimension_semantics=("parallel",),          # shard tiles over v7x's 2 TCs
            vmem_limit_bytes=32 * 1024 * 1024,          # ~10 MiB used; safe on all gens
        ),
    )(x_lanes, w1b, b1b, w2b, b2b)

    return y_lanes.reshape(b_pad, OUT_F)[:batch]              # free reshape + slice


def init_params(key):
    """Deterministic init with nn.Linear shapes: fc1 (3,4)/(3,), fc2 (2,3)/(2,)."""
    k1, k2, k3, k4 = jax.random.split(key, 4)
    w1 = jax.random.uniform(k1, (HID_F, IN_F), jnp.float32, -0.5, 0.5)
    b1 = jax.random.uniform(k2, (HID_F,), jnp.float32, -0.5, 0.5)
    w2 = jax.random.uniform(k3, (OUT_F, HID_F), jnp.float32, -0.5, 0.5)
    b2 = jax.random.uniform(k4, (OUT_F,), jnp.float32, -0.5, 0.5)
    return w1, b1, w2, b2


def _reference(x, w1, b1, w2, b2):
    """Full-precision pure-JAX reference of the PyTorch forward."""
    hi = jax.lax.Precision.HIGHEST
    h = jnp.maximum(jnp.matmul(x, w1.T, precision=hi) + b1, 0.0)
    return jnp.matmul(h, w2.T, precision=hi) + b2


if __name__ == "__main__":
    key = jax.random.PRNGKey(0)
    kx, kp = jax.random.split(key)
    w1, b1, w2, b2 = init_params(kp)

    # Pallas path: batch large enough to be worth a kernel launch (still tiny data).
    batch = 4096
    x = jax.random.normal(kx, (batch, IN_F), jnp.float32)
    out = jax.block_until_ready(mlp_forward(x, w1, b1, w2, b2))
    assert out.shape == (batch, OUT_F)
    # Tolerance leaves slack for the MXU's f32 pass strategy (bf16 passes in the
    # worst case); with full-precision passes the observed error is ~1e-6.
    assert jnp.allclose(out, _reference(x, w1, b1, w2, b2), **_TOL), "pallas path mismatch"

    # Ragged batch (not a multiple of 32): exercises the padded tail and the masked
    # boundary block of the cdiv grid.
    xr = jax.random.normal(kx, (batch + 17, IN_F), jnp.float32)
    out_r = jax.block_until_ready(mlp_forward(xr, w1, b1, w2, b2))
    assert out_r.shape == (batch + 17, OUT_F)
    assert jnp.allclose(out_r, _reference(xr, w1, b1, w2, b2), **_TOL), "ragged path mismatch"

    # Tiny batch (B=8): plain-XLA fallback per perf feedback (launch cost >> work).
    xs = jax.random.normal(kx, (8, IN_F), jnp.float32)
    out_s = jax.block_until_ready(mlp_forward(xs, w1, b1, w2, b2))
    assert jnp.allclose(out_s, _reference(xs, w1, b1, w2, b2), **_TOL), "fallback mismatch"

    # TODO(synk): nn.MSELoss / optim.Adam are training-time members of Model and not
    # part of Model.forward; intentionally not ported.
    print("KERNEL_OK")
</pallas_src>

<mosaic_0001>
module attributes {stable_mosaic.version = 11 : i64} {
  func.func @_mlp_kernel(%arg0: i32, %arg1: memref<64x128xf32, #tpu.memory_space<vmem>>, %arg2: memref<128x96xf32, #tpu.memory_space<vmem>>, %arg3: memref<1x96xf32, #tpu.memory_space<vmem>>, %arg4: memref<96x64xf32, #tpu.memory_space<vmem>>, %arg5: memref<1x64xf32, #tpu.memory_space<vmem>>, %arg6: memref<64x64xf32, #tpu.memory_space<vmem>>) attributes {dimension_semantics = [#tpu.dimension_semantics<parallel>], iteration_bounds = array<i64: 2>, scalar_prefetch = 0 : i64, scratch_operands = 0 : i64, tpu.core_type = #tpu.core_type<tc>, window_params = [{transform_indices = @transform_0, window_bounds = array<i64: 64, 128>}, {pipeline_mode = #tpu.pipeline_mode<synchronous>, transform_indices = @transform_1, window_bounds = array<i64: 128, 96>}, {pipeline_mode = #tpu.pipeline_mode<synchronous>, transform_indices = @transform_2, window_bounds = array<i64: 1, 96>}, {pipeline_mode = #tpu.pipeline_mode<synchronous>, transform_indices = @transform_3, window_bounds = array<i64: 96, 64>}, {pipeline_mode = #tpu.pipeline_mode<synchronous>, transform_indices = @transform_4, window_bounds = array<i64: 1, 64>}, {transform_indices = @transform_5, window_bounds = array<i64: 64, 64>}]} {
    %c0 = arith.constant 0 : index
    %c0_0 = arith.constant 0 : index
    %0 = vector.load %arg1[%c0, %c0_0] : memref<64x128xf32, #tpu.memory_space<vmem>>, vector<64x128xf32>
    %c0_1 = arith.constant 0 : index
    %c0_2 = arith.constant 0 : index
    %1 = vector.load %arg2[%c0_1, %c0_2] : memref<128x96xf32, #tpu.memory_space<vmem>>, vector<128x96xf32>
    %cst = arith.constant dense<0.000000e+00> : vector<64x96xf32>
    %2 = tpu.matmul %0, %1, %cst {dimension_numbers = #tpu.dot_dimension_numbers<[1], [0], [0], [1], [0, 0, 1, 1], [], []>} : vector<64x128xf32>, vector<128x96xf32>, vector<64x96xf32> -> vector<64x96xf32>
    %c0_3 = arith.constant 0 : index
    %c0_4 = arith.constant 0 : index
    %3 = vector.load %arg3[%c0_3, %c0_4] : memref<1x96xf32, #tpu.memory_space<vmem>>, vector<1x96xf32>
    %4 = vector.broadcast %3 : vector<1x96xf32> to vector<64x96xf32>
    %5 = arith.addf %2, %4 : vector<64x96xf32>
    %cst_5 = arith.constant 0.000000e+00 : f32
    %6 = vector.broadcast %cst_5 : f32 to vector<64x96xf32>
    %7 = arith.maximumf %5, %6 : vector<64x96xf32>
    %c0_6 = arith.constant 0 : index
    %c0_7 = arith.constant 0 : index
    %8 = vector.load %arg4[%c0_6, %c0_7] : memref<96x64xf32, #tpu.memory_space<vmem>>, vector<96x64xf32>
    %cst_8 = arith.constant dense<0.000000e+00> : vector<64x64xf32>
    %9 = tpu.matmul %7, %8, %cst_8 {dimension_numbers = #tpu.dot_dimension_numbers<[1], [0], [0], [1], [0, 0, 1, 1], [], []>} : vector<64x96xf32>, vector<96x64xf32>, vector<64x64xf32> -> vector<64x64xf32>
    %c0_9 = arith.constant 0 : index
    %c0_10 = arith.constant 0 : index
    %10 = vector.load %arg5[%c0_9, %c0_10] : memref<1x64xf32, #tpu.memory_space<vmem>>, vector<1x64xf32>
    %11 = vector.broadcast %10 : vector<1x64xf32> to vector<64x64xf32>
    %12 = arith.addf %9, %11 : vector<64x64xf32>
    %c0_11 = arith.constant 0 : index
    %c0_12 = arith.constant 0 : index
    %13 = vector.load %arg6[%c0_11, %c0_12] : memref<64x64xf32, #tpu.memory_space<vmem>>, vector<64x64xf32>
    tpu.vector_store %arg6[%c0_11, %c0_12], %12 {strides = array<i32>} : memref<64x64xf32, #tpu.memory_space<vmem>>, vector<64x64xf32>,
    return
  }
  func.func @transform_0(%arg0: i32) -> (i32, i32) {
    %c0_i32 = arith.constant 0 : i32
    %c0_i32_0 = arith.constant 0 : i32
    return %arg0, %c0_i32 : i32, i32
  }
  func.func @transform_1(%arg0: i32) -> (i32, i32) {
    %c0_i32 = arith.constant 0 : i32
    %c0_i32_0 = arith.constant 0 : i32
    %c0_i32_1 = arith.constant 0 : i32
    return %c0_i32, %c0_i32_0 : i32, i32
  }
  func.func @transform_2(%arg0: i32) -> (i32, i32) {
    %c0_i32 = arith.constant 0 : i32
    %c0_i32_0 = arith.constant 0 : i32
    %c0_i32_1 = arith.constant 0 : i32
    return %c0_i32, %c0_i32_0 : i32, i32
  }
  func.func @transform_3(%arg0: i32) -> (i32, i32) {
    %c0_i32 = arith.constant 0 : i32
    %c0_i32_0 = arith.constant 0 : i32
    %c0_i32_1 = arith.constant 0 : i32
    return %c0_i32, %c0_i32_0 : i32, i32
  }
  func.func @transform_4(%arg0: i32) -> (i32, i32) {
    %c0_i32 = arith.constant 0 : i32
    %c0_i32_0 = arith.constant 0 : i32
    %c0_i32_1 = arith.constant 0 : i32
    return %c0_i32, %c0_i32_0 : i32, i32
  }
  func.func @transform_5(%arg0: i32) -> (i32, i32) {
    %c0_i32 = arith.constant 0 : i32
    %c0_i32_0 = arith.constant 0 : i32
    return %arg0, %c0_i32 : i32, i32
  }
}

</mosaic_0001>

<bundles_post_ra>
// kernel: tile.13
= control target key start
LH: loop header
LB: loop body
LE: loop exit
PB: predicated region body
PF: predicated region fallthrough
CT: control target
= control target key end

     0   :  { %s40_s0 = inlined_call_operand.vmem [shape: f32[3], index: 0, kind: input, shape index: {}]   ;;  %s41_s1 = inlined_call_operand.vmem [shape: f32[32,3], index: 1, kind: output, shape index: {}]  }
   0x1   :  { %v4_v0 = vld [vmem:[%s40_s0] ss:$0 sm:$0xff] }
   0x2   :  { %5 = vst [vmem:[%s41_s1] sm:$0xff] %v4_v0 }
   0x3   :  { %12 = vst [vmem:[%s41_s1 + $0x8] sm:$0xff] %v4_v0 }
   0x4   :  { %13 = vst [vmem:[%s41_s1 + $0x10] sm:$0xff] %v4_v0 }
   0x5   :  { %14 = vst [vmem:[%s41_s1 + $0x18] sm:$0xff] %v4_v0 }

// kernel: tile.14
= control target key start
LH: loop header
LB: loop body
LE: loop exit
PB: predicated region body
PF: predicated region fallthrough
CT: control target
= control target key end

     0   :  { %s259_s10 = smov 93   ;;  %s260_s11 = smov 87   ;;  %vm3_vm0 = vcmask 23552   ;;  %vm9_vm1 = vcmask 786152   ;;  %vm15_vm2 = vcmask 761552   ;;  %vm21_vm3 = vcmask 736952   ;;  %s399_s0 = inlined_call_operand.vmem [shape: f32[32,3], index: 0, kind: input, shape index: {}]   ;;  %s400_s1 = inlined_call_operand.vmem [shape: f32[1,96], index: 1, kind: output, shape index: {}]  }
   0x1   :  { %v197_v0 = vld [vmem:[%s399_s0 + $0x1f] sm:$0x1]   ;;  %v199_v1 = vld [vmem:[%s399_s0 + $0x1d] sm:$0x1]   ;;  %v201_v2 = vld [vmem:[%s399_s0 + $0x1b] sm:$0x1]  }
   0x2   :  { %7 = vrot.lane.b32.xlu0 %v197_v0, %s259_s10  ;;  %19 = vrot.lane.b32.xlu1 %v199_v1, %s260_s11  ;;  %s261_s14 = smov 81   ;;  %v198_v3 = vld [vmem:[%s399_s0 + $0x1e] sm:$0x1]   ;;  %v200_v4 = vld [vmem:[%s399_s0 + $0x1c] sm:$0x1]   ;;  %s262_s19 = smov 90  }
   0x3   :  { %31 = vrot.lane.b32.xlu2 %v201_v2, %s261_s14  ;;  %s263_s20 = smov 84   ;;  %v202_v5 = vld [vmem:[%s399_s0 + $0x1a] sm:$0x1]   ;;  %s264_s23 = smov 78   ;;  %v203_v6 = vld [vmem:[%s399_s0 + $0x19] sm:$0x1]  }
   0x4   :  { %v204_v7 = vld [vmem:[%s399_s0 + $0x18] sm:$0x1]   ;;  %s265_s28 = smov 75   ;;  %s266_s29 = smov 72   ;;  %v205_v8 = vld [vmem:[%s399_s0 + $0x17] sm:$0x1]  }
   0x5   :  { %s267_s3 = smov 69   ;;  %v206_v9 = vld [vmem:[%s399_s0 + $0x16] sm:$0x1]   ;;  %v207_v10 = vld [vmem:[%s399_s0 + $0x15] sm:$0x1]   ;;  %s268_s8 = smov 66  }
   0x6   :  { %s269_s9 = smov 63   ;;  %v208_v11 = vld [vmem:[%s399_s0 + $0x14] sm:$0x1]   ;;  %s270_s12 = smov 60   ;;  %v209_v12 = vld [vmem:[%s399_s0 + $0x13] sm:$0x1]  }
   0x7   :  { %v210_v13 = vld [vmem:[%s399_s0 + $0x12] sm:$0x1]   ;;  %s271_s17 = smov 57   ;;  %s272_s18 = smov 54   ;;  %v211_v14 = vld [vmem:[%s399_s0 + $0x11] sm:$0x1]  }
   0x8   :  { %s273_s21 = smov 51   ;;  %v212_v15 = vld [vmem:[%s399_s0 + $0x10] sm:$0x1]   ;;  %v213_v16 = vld [vmem:[%s399_s0 + $0xf] sm:$0x1]   ;;  %s274_s26 = smov 48  }
   0x9   :  { %s275_s27 = smov 45   ;;  %v214_v17 = vld [vmem:[%s399_s0 + $0xe] sm:$0x1]   ;;  %s276_s30 = smov 42   ;;  %v215_v18 = vld [vmem:[%s399_s0 + $0xd] sm:$0x1]  }
   0xa   :  { %13 = vrot.lane.b32.xlu0 %v198_v3, %s262_s19  ;;  %25 = vrot.lane.b32.xlu1 %v200_v4, %s263_s20  ;;  %v216_v19 = vld [vmem:[%s399_s0 + $0xc] sm:$0x1]   ;;  %s277_s6 = smov 39   ;;  %s278_s7 = smov 36   ;;  %v217_v20 = vld [vmem:[%s399_s0 + $0xb] sm:$0x1]  }
   0xb   :  { %37 = vrot.lane.b32.xlu2 %v202_v5, %s264_s23  ;;  %s279_s10 = smov 33   ;;  %v218_v21 = vld [vmem:[%s399_s0 + $0xa] sm:$0x1]   ;;  %v219_v22 = vld [vmem:[%s399_s0 + $0x9] sm:$0x1]   ;;  %s280_s15 = smov 30  }
   0xc   :  { %s281_s16 = smov 27   ;;  %v220_v23 = vld [vmem:[%s399_s0 + $0x8] sm:$0x1]   ;;  %s282_s19 = smov 24   ;;  %v221_v24 = vld [vmem:[%s399_s0 + $0x7] sm:$0x1]  }
   0xd   :  { %v222_v25 = vld [vmem:[%s399_s0 + $0x6] sm:$0x1]   ;;  %s283_s24 = smov 21   ;;  %s284_s25 = smov 18   ;;  %v223_v26 = vld [vmem:[%s399_s0 + $0x5] sm:$0x1]  }
   0xe   :  { %v224_v27 = vld [vmem:[%s399_s0 + $0x4] sm:$0x1]   ;;  %v225_v28 = vld [vmem:[%s399_s0 + $0x3] sm:$0x1]   ;;  %s286_s4 = smov 12   ;;  %s287_s5 = smov 9  }
   0xf   :  { %v226_v29 = vld [vmem:[%s399_s0 + $0x2] sm:$0x1]   ;;  %v227_v30 = vld [vmem:[%s399_s0 + $0x1] sm:$0x1]   ;;  %s289_s11 = smov 3   ;;  %vm27_vm4 = vcmask 712352  }
  0x10   :  { %v2_v31 = vld [vmem:[%s399_s0] sm:$0x1]   ;;  %vm33_vm5 = vcmask 687752   ;;  %vm39_vm6 = vcmask 663152   ;;  %vm45_vm7 = vcmask 638552   ;;  %vm51_vm8 = vcmask 613952  }
  0x11   :  { %4 = vst.msk [vmem:[#allocation0] sm:$0x1] %vm3_vm0, %v2_v31   ;;  %vm57_vm9 = vcmask 589352   ;;  %vm63_vm10 = vcmask 564752   ;;  %vm69_vm11 = vcmask 540152   ;;  %vm75_vm12 = vcmask 515552  }
  0x12   :  { %43 = vrot.lane.b32.xlu0 %v203_v6, %s265_s28  ;;  %49 = vrot.lane.b32.xlu1 %v204_v7, %s266_s29  ;;  %s285_s28 = smov 15   ;;  %vm81_vm13 = vcmask 490952   ;;  %vm87_vm14 = vcmask 466352   ;;  %vm93_vm15 = vcmask 441752   ;;  %vm99_vm0 = vcmask 417152  }
  0x13   :  { %55 = vrot.lane.b32.xlu2 %v205_v8, %s267_s3 }
  0x1a   :  { %61 = vrot.lane.b32.xlu0 %v206_v9, %s268_s8  ;;  %67 = vrot.lane.b32.xlu1 %v207_v10, %s269_s9  ;;  %s288_s8 = smov 6  }
  0x1b   :  { %73 = vrot.lane.b32.xlu2 %v208_v11, %s270_s12 }
  0x22   :  { %79 = vrot.lane.b32.xlu0 %v209_v12, %s271_s17  ;;  %85 = vrot.lane.b32.xlu1 %v210_v13, %s272_s18 }
  0x23   :  { %91 = vrot.lane.b32.xlu2 %v211_v14, %s273_s21 }
  0x2a   :  { %97 = vrot.lane.b32.xlu0 %v212_v15, %s274_s26  ;;  %103 = vrot.lane.b32.xlu1 %v213_v16, %s275_s27 }
  0x2b   :  { %109 = vrot.lane.b32.xlu2 %v214_v17, %s276_s30 }
  0x32   :  { %115 = vrot.lane.b32.xlu0 %v215_v18, %s277_s6  ;;  %121 = vrot.lane.b32.xlu1 %v216_v19, %s278_s7 }
  0x33   :  { %127 = vrot.lane.b32.xlu2 %v217_v20, %s279_s10 }
  0x3a   :  { %133 = vrot.lane.b32.xlu0 %v218_v21, %s280_s15  ;;  %139 = vrot.lane.b32.xlu1 %v219_v22, %s281_s16 }
  0x3b   :  { %145 = vrot.lane.b32.xlu2 %v220_v23, %s282_s19 }
  0x42   :  { %151 = vrot.lane.b32.xlu0 %v221_v24, %s283_s24  ;;  %157 = vrot.lane.b32.xlu1 %v222_v25, %s284_s25 }
  0x43   :  { %163 = vrot.lane.b32.xlu2 %v223_v26, %s285_s28 }
  0x4a   :  { %169 = vrot.lane.b32.xlu0 %v224_v27, %s286_s4  ;;  %175 = vrot.lane.b32.xlu1 %v225_v28, %s287_s5 }
  0x4b   :  { %181 = vrot.lane.b32.xlu2 %v226_v29, %s288_s8 }
  0x52   :  { %187 = vrot.lane.b32.xlu0 %v227_v30, %s289_s11 }
  0x5d   :  { %v32_v32 = vpop.permute.xlu2 %31  }
  0x65   :  { %v38_v33 = vpop.permute.xlu2 %37  }
  0x6d   :  { %v56_v34 = vpop.permute.xlu2 %55  }
  0x74   :  { %v8_v35 = vpop.permute.xlu0 %7   ;;  %v20_v36 = vpop.permute.xlu1 %19  }
  0x75   :  { %10 = vst.msk [vmem:[#allocation0] sm:$0x1] %vm9_vm1, %v8_v35   ;;  %v74_v37 = vpop.permute.xlu2 %73   ;;  %vm105_vm1 = vcmask 392552  }
  0x7c   :  { %v14_v38 = vpop.permute.xlu0 %13   ;;  %v26_v39 = vpop.permute.xlu1 %25  }
  0x7d   :  { %16 = vst.msk [vmem:[#allocation0] sm:$0x1] %vm15_vm2, %v14_v38   ;;  %v92_v40 = vpop.permute.xlu2 %91   ;;  %vm111_vm2 = vcmask 367952  }
  0x7e   :  { %22 = vst.msk [vmem:[#allocation0] sm:$0x1] %vm21_vm3, %v20_v36   ;;  %vm117_vm3 = vcmask 343352  }
  0x7f   :  { %28 = vst.msk [vmem:[#allocation0] sm:$0x1] %vm27_vm4, %v26_v39   ;;  %vm123_vm4 = vcmask 318752  }
  0x80   :  { %34 = vst.msk [vmem:[#allocation0] sm:$0x1] %vm33_vm5, %v32_v32   ;;  %vm129_vm5 = vcmask 294152  }
  0x81   :  { %40 = vst.msk [vmem:[#allocation0] sm:$0x1] %vm39_vm6, %v38_v33   ;;  %vm135_vm6 = vcmask 269552  }
  0x84   :  { %v44_v41 = vpop.permute.xlu0 %43   ;;  %v50_v42 = vpop.permute.xlu1 %49  }
  0x85   :  { %46 = vst.msk [vmem:[#allocation0] sm:$0x1] %vm45_vm7, %v44_v41   ;;  %v110_v43 = vpop.permute.xlu2 %109   ;;  %vm141_vm7 = vcmask 244952  }
  0x86   :  { %52 = vst.msk [vmem:[#allocation0] sm:$0x1] %vm51_vm8, %v50_v42   ;;  %vm147_vm8 = vcmask 220352  }
  0x87   :  { %58 = vst.msk [vmem:[#allocation0] sm:$0x1] %vm57_vm9, %v56_v34   ;;  %vm153_vm9 = vcmask 195752  }
  0x8c   :  { %v62_v44 = vpop.permute.xlu0 %61   ;;  %v68_v45 = vpop.permute.xlu1 %67  }
  0x8d   :  { %64 = vst.msk [vmem:[#allocation0] sm:$0x1] %vm63_vm10, %v62_v44   ;;  %v128_v46 = vpop.permute.xlu2 %127   ;;  %vm159_vm10 = vcmask 171152  }
  0x8e   :  { %70 = vst.msk [vmem:[#allocation0] sm:$0x1] %vm69_vm11, %v68_v45   ;;  %vm165_vm11 = vcmask 146552  }
  0x8f   :  { %76 = vst.msk [vmem:[#allocation0] sm:$0x1] %vm75_vm12, %v74_v37   ;;  %vm171_vm12 = vcmask 121952  }
  0x94   :  { %v80_v47 = vpop.permute.xlu0 %79   ;;  %v86_v48 = vpop.permute.xlu1 %85  }
  0x95   :  { %82 = vst.msk [vmem:[#allocation0] sm:$0x1] %vm81_vm13, %v80_v47   ;;  %v146_v49 = vpop.permute.xlu2 %145   ;;  %vm177_vm13 = vcmask 97352  }
  0x96   :  { %88 = vst.msk [vmem:[#allocation0] sm:$0x1] %vm87_vm14, %v86_v48   ;;  %vm183_vm14 = vcmask 72752  }
  0x97   :  { %94 = vst.msk [vmem:[#allocation0] sm:$0x1] %vm93_vm15, %v92_v40   ;;  %vm189_vm15 = vcmask 48152  }
  0x9c   :  { %v98_v50 = vpop.permute.xlu0 %97   ;;  %v104_v51 = vpop.permute.xlu1 %103  }
  0x9d   :  { %100 = vst.msk [vmem:[#allocation0] sm:$0x1] %vm99_vm0, %v98_v50   ;;  %v164_v52 = vpop.permute.xlu2 %163  }
  0x9e   :  { %106 = vst.msk [vmem:[#allocation0] sm:$0x1] %vm105_vm1, %v104_v51  }
  0x9f   :  { %112 = vst.msk [vmem:[#allocation0] sm:$0x1] %vm111_vm2, %v110_v43  }
  0xa4   :  { %v116_v53 = vpop.permute.xlu0 %115   ;;  %v122_v54 = vpop.permute.xlu1 %121  }
  0xa5   :  { %118 = vst.msk [vmem:[#allocation0] sm:$0x1] %vm117_vm3, %v116_v53   ;;  %v182_v55 = vpop.permute.xlu2 %181  }
  0xa6   :  { %124 = vst.msk [vmem:[#allocation0] sm:$0x1] %vm123_vm4, %v122_v54  }
  0xa7   :  { %130 = vst.msk [vmem:[#allocation0] sm:$0x1] %vm129_vm5, %v128_v46  }
  0xac   :  { %v134_v56 = vpop.permute.xlu0 %133   ;;  %v140_v57 = vpop.permute.xlu1 %139  }
  0xad   :  { %136 = vst.msk [vmem:[#allocation0] sm:$0x1] %vm135_vm6, %v134_v56  }
  0xae   :  { %142 = vst.msk [vmem:[#allocation0] sm:$0x1] %vm141_vm7, %v140_v57  }
  0xaf   :  { %148 = vst.msk [vmem:[#allocation0] sm:$0x1] %vm147_vm8, %v146_v49  }
  0xb4   :  { %v152_v58 = vpop.permute.xlu0 %151   ;;  %v158_v59 = vpop.permute.xlu1 %157  }
  0xb5   :  { %154 = vst.msk [vmem:[#allocation0] sm:$0x1] %vm153_vm9, %v152_v58  }
  0xb6   :  { %160 = vst.msk [vmem:[#allocation0] sm:$0x1] %vm159_vm10, %v158_v59  }
  0xb7   :  { %166 = vst.msk [vmem:[#allocation0] sm:$0x1] %vm165_vm11, %v164_v52  }
  0xbc   :  { %v170_v60 = vpop.permute.xlu0 %169   ;;  %v176_v61 = vpop.permute.xlu1 %175  }
  0xbd   :  { %172 = vst.msk [vmem:[#allocation0] sm:$0x1] %vm171_vm12, %v170_v60  }
  0xbe   :  { %178 = vst.msk [vmem:[#allocation0] sm:$0x1] %vm177_vm13, %v176_v61  }
  0xbf   :  { %184 = vst.msk [vmem:[#allocation0] sm:$0x1] %vm183_vm14, %v182_v55  }
  0xc4   :  { %v188_v62 = vpop.permute.xlu0 %187  }
  0xc5   :  { %190 = vst.msk [vmem:[#allocation0] sm:$0x1] %vm189_vm15, %v188_v62  }
  0xcc   :  { %v193_v63 = vld [vmem:[#allocation0] sm:$0x1] }
  0xcd   :  { %196 = vst [vmem:[%s400_s1] sm:$0x1] %v193_v63 }

// kernel: tile.18
= control target key start
LH: loop header
LB: loop body
LE: loop exit
PB: predicated region body
PF: predicated region fallthrough
CT: control target
= control target key end

     0   :  { %s40_s0 = inlined_call_operand.vmem [shape: f32[2], index: 0, kind: input, shape index: {}]   ;;  %s41_s1 = inlined_call_operand.vmem [shape: f32[32,2], index: 1, kind: output, shape index: {}]  }
   0x1   :  { %v4_v0 = vld [vmem:[%s40_s0] ss:$0 sm:$0xff] }
   0x2   :  { %5 = vst [vmem:[%s41_s1] sm:$0xff] %v4_v0 }
   0x3   :  { %12 = vst [vmem:[%s41_s1 + $0x8] sm:$0xff] %v4_v0 }
   0x4   :  { %13 = vst [vmem:[%s41_s1 + $0x10] sm:$0xff] %v4_v0 }
   0x5   :  { %14 = vst [vmem:[%s41_s1 + $0x18] sm:$0xff] %v4_v0 }

// kernel: tile.19
= control target key start
LH: loop header
LB: loop body
LE: loop exit
PB: predicated region body
PF: predicated region fallthrough
CT: control target
= control target key end

     0   :  { %s259_s10 = smov 62   ;;  %s260_s11 = smov 58   ;;  %vm3_vm0 = vcmask 15360   ;;  %vm9_vm1 = vcmask 523760   ;;  %vm15_vm2 = vcmask 507360   ;;  %vm21_vm3 = vcmask 490960   ;;  %s399_s0 = inlined_call_operand.vmem [shape: f32[32,2], index: 0, kind: input, shape index: {}]   ;;  %s400_s1 = inlined_call_operand.vmem [shape: f32[1,64], index: 1, kind: output, shape index: {}]  }
   0x1   :  { %v197_v0 = vld [vmem:[%s399_s0 + $0x1f] sm:$0x1]   ;;  %v199_v1 = vld [vmem:[%s399_s0 + $0x1d] sm:$0x1]   ;;  %v201_v2 = vld [vmem:[%s399_s0 + $0x1b] sm:$0x1]  }
   0x2   :  { %7 = vrot.lane.b32.xlu0 %v197_v0, %s259_s10  ;;  %19 = vrot.lane.b32.xlu1 %v199_v1, %s260_s11  ;;  %s261_s14 = smov 54   ;;  %v198_v3 = vld [vmem:[%s399_s0 + $0x1e] sm:$0x1]   ;;  %v200_v4 = vld [vmem:[%s399_s0 + $0x1c] sm:$0x1]   ;;  %s262_s19 = smov 60  }
   0x3   :  { %31 = vrot.lane.b32.xlu2 %v201_v2, %s261_s14  ;;  %s263_s20 = smov 56   ;;  %v202_v5 = vld [vmem:[%s399_s0 + $0x1a] sm:$0x1]   ;;  %s264_s23 = smov 52   ;;  %v203_v6 = vld [vmem:[%s399_s0 + $0x19] sm:$0x1]  }
   0x4   :  { %v204_v7 = vld [vmem:[%s399_s0 + $0x18] sm:$0x1]   ;;  %s265_s28 = smov 50   ;;  %s266_s29 = smov 48   ;;  %v205_v8 = vld [vmem:[%s399_s0 + $0x17] sm:$0x1]  }
   0x5   :  { %s267_s3 = smov 46   ;;  %v206_v9 = vld [vmem:[%s399_s0 + $0x16] sm:$0x1]   ;;  %v207_v10 = vld [vmem:[%s399_s0 + $0x15] sm:$0x1]   ;;  %s268_s8 = smov 44  }
   0x6   :  { %s269_s9 = smov 42   ;;  %v208_v11 = vld [vmem:[%s399_s0 + $0x14] sm:$0x1]   ;;  %s270_s12 = smov 40   ;;  %v209_v12 = vld [vmem:[%s399_s0 + $0x13] sm:$0x1]  }
   0x7   :  { %v210_v13 = vld [vmem:[%s399_s0 + $0x12] sm:$0x1]   ;;  %s271_s17 = smov 38   ;;  %s272_s18 = smov 36   ;;  %v211_v14 = vld [vmem:[%s399_s0 + $0x11] sm:$0x1]  }
   0x8   :  { %s273_s21 = smov 34   ;;  %v212_v15 = vld [vmem:[%s399_s0 + $0x10] sm:$0x1]   ;;  %v213_v16 = vld [vmem:[%s399_s0 + $0xf] sm:$0x1]   ;;  %s274_s26 = smov 32  }
   0x9   :  { %s275_s27 = smov 30   ;;  %v214_v17 = vld [vmem:[%s399_s0 + $0xe] sm:$0x1]   ;;  %s276_s30 = smov 28   ;;  %v215_v18 = vld [vmem:[%s399_s0 + $0xd] sm:$0x1]  }
   0xa   :  { %13 = vrot.lane.b32.xlu0 %v198_v3, %s262_s19  ;;  %25 = vrot.lane.b32.xlu1 %v200_v4, %s263_s20  ;;  %v216_v19 = vld [vmem:[%s399_s0 + $0xc] sm:$0x1]   ;;  %s277_s6 = smov 26   ;;  %s278_s7 = smov 24   ;;  %v217_v20 = vld [vmem:[%s399_s0 + $0xb] sm:$0x1]  }
   0xb   :  { %37 = vrot.lane.b32.xlu2 %v202_v5, %s264_s23  ;;  %s279_s10 = smov 22   ;;  %v218_v21 = vld [vmem:[%s399_s0 + $0xa] sm:$0x1]   ;;  %v219_v22 = vld [vmem:[%s399_s0 + $0x9] sm:$0x1]   ;;  %s280_s15 = smov 20  }
   0xc   :  { %s281_s16 = smov 18   ;;  %v220_v23 = vld [vmem:[%s399_s0 + $0x8] sm:$0x1]   ;;  %s282_s19 = smov 16   ;;  %v221_v24 = vld [vmem:[%s399_s0 + $0x7] sm:$0x1]  }
   0xd   :  { %v222_v25 = vld [vmem:[%s399_s0 + $0x6] sm:$0x1]   ;;  %s283_s24 = smov 14   ;;  %s284_s25 = smov 12   ;;  %v223_v26 = vld [vmem:[%s399_s0 + $0x5] sm:$0x1]  }
   0xe   :  { %v224_v27 = vld [vmem:[%s399_s0 + $0x4] sm:$0x1]   ;;  %v225_v28 = vld [vmem:[%s399_s0 + $0x3] sm:$0x1]   ;;  %s286_s4 = smov 8   ;;  %s287_s5 = smov 6  }
   0xf   :  { %v226_v29 = vld [vmem:[%s399_s0 + $0x2] sm:$0x1]   ;;  %v227_v30 = vld [vmem:[%s399_s0 + $0x1] sm:$0x1]   ;;  %s289_s11 = smov 2   ;;  %vm27_vm4 = vcmask 474560  }
  0x10   :  { %v2_v31 = vld [vmem:[%s399_s0] sm:$0x1]   ;;  %vm33_vm5 = vcmask 458160   ;;  %vm39_vm6 = vcmask 441760   ;;  %vm45_vm7 = vcmask 425360   ;;  %vm51_vm8 = vcmask 408960  }
  0x11   :  { %4 = vst.msk [vmem:[#allocation0] sm:$0x1] %vm3_vm0, %v2_v31   ;;  %vm57_vm9 = vcmask 392560   ;;  %vm63_vm10 = vcmask 376160   ;;  %vm69_vm11 = vcmask 359760   ;;  %vm75_vm12 = vcmask 343360  }
  0x12   :  { %43 = vrot.lane.b32.xlu0 %v203_v6, %s265_s28  ;;  %49 = vrot.lane.b32.xlu1 %v204_v7, %s266_s29  ;;  %s285_s28 = smov 10   ;;  %vm81_vm13 = vcmask 326960   ;;  %vm87_vm14 = vcmask 310560   ;;  %vm93_vm15 = vcmask 294160   ;;  %vm99_vm0 = vcmask 277760  }
  0x13   :  { %55 = vrot.lane.b32.xlu2 %v205_v8, %s267_s3 }
  0x1a   :  { %61 = vrot.lane.b32.xlu0 %v206_v9, %s268_s8  ;;  %67 = vrot.lane.b32.xlu1 %v207_v10, %s269_s9  ;;  %s288_s8 = smov 4  }
  0x1b   :  { %73 = vrot.lane.b32.xlu2 %v208_v11, %s270_s12 }
  0x22   :  { %79 = vrot.lane.b32.xlu0 %v209_v12, %s271_s17  ;;  %85 = vrot.lane.b32.xlu1 %v210_v13, %s272_s18 }
  0x23   :  { %91 = vrot.lane.b32.xlu2 %v211_v14, %s273_s21 }
  0x2a   :  { %97 = vrot.lane.b32.xlu0 %v212_v15, %s274_s26  ;;  %103 = vrot.lane.b32.xlu1 %v213_v16, %s275_s27 }
  0x2b   :  { %109 = vrot.lane.b32.xlu2 %v214_v17, %s276_s30 }
  0x32   :  { %115 = vrot.lane.b32.xlu0 %v215_v18, %s277_s6  ;;  %121 = vrot.lane.b32.xlu1 %v216_v19, %s278_s7 }
  0x33   :  { %127 = vrot.lane.b32.xlu2 %v217_v20, %s279_s10 }
  0x3a   :  { %133 = vrot.lane.b32.xlu0 %v218_v21, %s280_s15  ;;  %139 = vrot.lane.b32.xlu1 %v219_v22, %s281_s16 }
  0x3b   :  { %145 = vrot.lane.b32.xlu2 %v220_v23, %s282_s19 }
  0x42   :  { %151 = vrot.lane.b32.xlu0 %v221_v24, %s283_s24  ;;  %157 = vrot.lane.b32.xlu1 %v222_v25, %s284_s25 }
  0x43   :  { %163 = vrot.lane.b32.xlu2 %v223_v26, %s285_s28 }
  0x4a   :  { %169 = vrot.lane.b32.xlu0 %v224_v27, %s286_s4  ;;  %175 = vrot.lane.b32.xlu1 %v225_v28, %s287_s5 }
  0x4b   :  { %181 = vrot.lane.b32.xlu2 %v226_v29, %s288_s8 }
  0x52   :  { %187 = vrot.lane.b32.xlu0 %v227_v30, %s289_s11 }
  0x5d   :  { %v32_v32 = vpop.permute.xlu2 %31  }
  0x65   :  { %v38_v33 = vpop.permute.xlu2 %37  }
  0x6d   :  { %v56_v34 = vpop.permute.xlu2 %55  }
  0x74   :  { %v8_v35 = vpop.permute.xlu0 %7   ;;  %v20_v36 = vpop.permute.xlu1 %19  }
  0x75   :  { %10 = vst.msk [vmem:[#allocation0] sm:$0x1] %vm9_vm1, %v8_v35   ;;  %v74_v37 = vpop.permute.xlu2 %73   ;;  %vm105_vm1 = vcmask 261360  }
  0x7c   :  { %v14_v38 = vpop.permute.xlu0 %13   ;;  %v26_v39 = vpop.permute.xlu1 %25  }
  0x7d   :  { %16 = vst.msk [vmem:[#allocation0] sm:$0x1] %vm15_vm2, %v14_v38   ;;  %v92_v40 = vpop.permute.xlu2 %91   ;;  %vm111_vm2 = vcmask 244960  }
  0x7e   :  { %22 = vst.msk [vmem:[#allocation0] sm:$0x1] %vm21_vm3, %v20_v36   ;;  %vm117_vm3 = vcmask 228560  }
  0x7f   :  { %28 = vst.msk [vmem:[#allocation0] sm:$0x1] %vm27_vm4, %v26_v39   ;;  %vm123_vm4 = vcmask 212160  }
  0x80   :  { %34 = vst.msk [vmem:[#allocation0] sm:$0x1] %vm33_vm5, %v32_v32   ;;  %vm129_vm5 = vcmask 195760  }
  0x81   :  { %40 = vst.msk [vmem:[#allocation0] sm:$0x1] %vm39_vm6, %v38_v33   ;;  %vm135_vm6 = vcmask 179360  }
  0x84   :  { %v44_v41 = vpop.permute.xlu0 %43   ;;  %v50_v42 = vpop.permute.xlu1 %49  }
  0x85   :  { %46 = vst.msk [vmem:[#allocation0] sm:$0x1] %vm45_vm7, %v44_v41   ;;  %v110_v43 = vpop.permute.xlu2 %109   ;;  %vm141_vm7 = vcmask 162960  }
  0x86   :  { %52 = vst.msk [vmem:[#allocation0] sm:$0x1] %vm51_vm8, %v50_v42   ;;  %vm147_vm8 = vcmask 146560  }
  0x87   :  { %58 = vst.msk [vmem:[#allocation0] sm:$0x1] %vm57_vm9, %v56_v34   ;;  %vm153_vm9 = vcmask 130160  }
  0x8c   :  { %v62_v44 = vpop.permute.xlu0 %61   ;;  %v68_v45 = vpop.permute.xlu1 %67  }
  0x8d   :  { %64 = vst.msk [vmem:[#allocation0] sm:$0x1] %vm63_vm10, %v62_v44   ;;  %v128_v46 = vpop.permute.xlu2 %127   ;;  %vm159_vm10 = vcmask 113760  }
  0x8e   :  { %70 = vst.msk [vmem:[#allocation0] sm:$0x1] %vm69_vm11, %v68_v45   ;;  %vm165_vm11 = vcmask 97360  }
  0x8f   :  { %76 = vst.msk [vmem:[#allocation0] sm:$0x1] %vm75_vm12, %v74_v37   ;;  %vm171_vm12 = vcmask 80960  }
  0x94   :  { %v80_v47 = vpop.permute.xlu0 %79   ;;  %v86_v48 = vpop.permute.xlu1 %85  }
  0x95   :  { %82 = vst.msk [vmem:[#allocation0] sm:$0x1] %vm81_vm13, %v80_v47   ;;  %v146_v49 = vpop.permute.xlu2 %145   ;;  %vm177_vm13 = vcmask 64560  }
  0x96   :  { %88 = vst.msk [vmem:[#allocation0] sm:$0x1] %vm87_vm14, %v86_v48   ;;  %vm183_vm14 = vcmask 48160  }
  0x97   :  { %94 = vst.msk [vmem:[#allocation0] sm:$0x1] %vm93_vm15, %v92_v40   ;;  %vm189_vm15 = vcmask 31760  }
  0x9c   :  { %v98_v50 = vpop.permute.xlu0 %97   ;;  %v104_v51 = vpop.permute.xlu1 %103  }
  0x9d   :  { %100 = vst.msk [vmem:[#allocation0] sm:$0x1] %vm99_vm0, %v98_v50   ;;  %v164_v52 = vpop.permute.xlu2 %163  }
  0x9e   :  { %106 = vst.msk [vmem:[#allocation0] sm:$0x1] %vm105_vm1, %v104_v51  }
  0x9f   :  { %112 = vst.msk [vmem:[#allocation0] sm:$0x1] %vm111_vm2, %v110_v43  }
  0xa4   :  { %v116_v53 = vpop.permute.xlu0 %115   ;;  %v122_v54 = vpop.permute.xlu1 %121  }
  0xa5   :  { %118 = vst.msk [vmem:[#allocation0] sm:$0x1] %vm117_vm3, %v116_v53   ;;  %v182_v55 = vpop.permute.xlu2 %181  }
  0xa6   :  { %124 = vst.msk [vmem:[#allocation0] sm:$0x1] %vm123_vm4, %v122_v54  }
  0xa7   :  { %130 = vst.msk [vmem:[#allocation0] sm:$0x1] %vm129_vm5, %v128_v46  }
  0xac   :  { %v134_v56 = vpop.permute.xlu0 %133   ;;  %v140_v57 = vpop.permute.xlu1 %139  }
  0xad   :  { %136 = vst.msk [vmem:[#allocation0] sm:$0x1] %vm135_vm6, %v134_v56  }
  0xae   :  { %142 = vst.msk [vmem:[#allocation0] sm:$0x1] %vm141_vm7, %v140_v57  }
  0xaf   :  { %148 = vst.msk [vmem:[#allocation0] sm:$0x1] %vm147_vm8, %v146_v49  }
  0xb4   :  { %v152_v58 = vpop.permute.xlu0 %151   ;;  %v158_v59 = vpop.permute.xlu1 %157  }
  0xb5   :  { %154 = vst.msk [vmem:[#allocation0] sm:$0x1] %vm153_vm9, %v152_v58  }
  0xb6   :  { %160 = vst.msk [vmem:[#allocation0] sm:$0x1] %vm159_vm10, %v158_v59  }
  0xb7   :  { %166 = vst.msk [vmem:[#allocation0] sm:$0x1] %vm165_vm11, %v164_v52  }
  0xbc   :  { %v170_v60 = vpop.permute.xlu0 %169   ;;  %v176_v61 = vpop.permute.xlu1 %175  }
  0xbd   :  { %172 = vst.msk [vmem:[#allocation0] sm:$0x1] %vm171_vm12, %v170_v60  }
  0xbe   :  { %178 = vst.msk [vmem:[#allocation0] sm:$0x1] %vm177_vm13, %v176_v61  }
  0xbf   :  { %184 = vst.msk [vmem:[#allocation0] sm:$0x1] %vm183_vm14, %v182_v55  }
  0xc4   :  { %v188_v62 = vpop.permute.xlu0 %187  }
  0xc5   :  { %190 = vst.msk [vmem:[#allocation0] sm:$0x1] %vm189_vm15, %v188_v62  }
  0xcc   :  { %v193_v63 = vld [vmem:[#allocation0] sm:$0x1] }
  0xcd   :  { %196 = vst [vmem:[%s400_s1] sm:$0x1] %v193_v63 }

// kernel: mlp_forward.1
= control target key start
LH: loop header
LB: loop body
LE: loop exit
PB: predicated region body
PF: predicated region fallthrough
CT: control target
= control target key end

     0   :  { %s547_s18 = smov 0   ;;  %s687_s0 = inlined_call_operand.vmem [shape: f32[128,128], index: 0, kind: input, shape index: {}]   ;;  %s688_s1 = inlined_call_operand.vmem [shape: f32[128,96], index: 1, kind: input, shape index: {}]   ;;  %s689_s2 = inlined_call_operand.vmem [shape: f32[1,96], index: 2, kind: input, shape index: {}]   ;;  %s690_s3 = inlined_call_operand.vmem [shape: f32[96,64], index: 3, kind: input, shape index: {}]   ;;  %s691_s4 = inlined_call_operand.vmem [shape: f32[1,64], index: 4, kind: input, shape index: {}]   ;;  %s692_s5 = inlined_call_operand.vmem [shape: f32[128,64], index: 5, kind: output, shape index: {}]  }
   0x1 LB: > { %s452_s19 = sadd.s32 4294967295, %s515_s18   ;;  %p456_p0 = scmp.ge.s32.totalorder %s515_s18, 1  ;;  %s515_s18 = sphi %s547_s18, %s15_s18  }
   0x2   : > { %p188_p1 = scmp.lt.s32.totalorder %s515_s18, 3 }
   0x4   : > { %p189_p2 = pnand %p456_p0, %p188_p1 }
   0x5   : > { %s457_s11 = sshll.u32 (!%p189_p2), %s452_s19, 3 }
   0x6   : > { %192 = sbr.rel (%p189_p2) target bundleno = 346 (0x15a), region = 40  ;;  %p217_p3 = scmp.lt.s32.totalorder (!%p189_p2), %s457_s11, 15 }
   0xb   : > { %v251_v0 = vld [vmem:[%s688_s1 + $0x78] sm:$0xff]  ;;  %v250_v1 = vld [vmem:[%s688_s1 + $0x70] sm:$0xff]  ;;  %v249_v2 = vld [vmem:[%s688_s1 + $0x68] sm:$0xff]  ;;  %s694_s11 = smov (!%p217_p3, %s457_s11), 15  ;;  %vm321_vm0 = vcmask 785408   ;;  %vm387_vm1 = vcmask 523264  }
   0xc   : > { %256 = vmatpush.msra.mxu0 %v251_v0  ;;  %471 = vmatpush.msra.mxu2 %v251_v0  ;;  %v248_v3 = vld [vmem:[%s688_s1 + $0x60] sm:$0xff]  ;;  %v247_v4 = vld [vmem:[%s688_s1 + $0x58] sm:$0xff]  ;;  %v246_v5 = vld [vmem:[%s688_s1 + $0x50] sm:$0xff]  ;;  %s458_s23 = sshll.u32 %s694_s11, 3 }
   0xd   : > { %v245_v6 = vld [vmem:[%s688_s1 + $0x48] sm:$0xff]  ;;  %v244_v7 = vld [vmem:[%s688_s1 + $0x40] sm:$0xff]  ;;  %v243_v8 = vld [vmem:[%s688_s1 + $0x38] sm:$0xff]  ;;  %s608_s30 = scalar_lea.vmem %s687_s0, %s458_s23  ;;  %s226_s17 = scalar_lea.vmem %s692_s5, %s458_s23 }
   0xe   : > { %257 = vmatpush.msra.mxu0 %v250_v1  ;;  %472 = vmatpush.msra.mxu2 %v250_v1  ;;  %v242_v9 = vld [vmem:[%s688_s1 + $0x30] sm:$0xff]  ;;  %v241_v10 = vld [vmem:[%s688_s1 + $0x28] sm:$0xff]  ;;  %v240_v11 = vld [vmem:[%s688_s1 + $0x20] sm:$0xff] }
   0xf   : > { %v239_v12 = vld [vmem:[%s688_s1 + $0x18] sm:$0xff]  ;;  %v238_v13 = vld [vmem:[%s688_s1 + $0x10] sm:$0xff]  ;;  %v237_v14 = vld [vmem:[%s688_s1 + $0x8] sm:$0xff] }
  0x10   : > { %258 = vmatpush.msra.mxu0 %v249_v2  ;;  %473 = vmatpush.msra.mxu2 %v249_v2  ;;  %v236_v15 = vld [vmem:[%s688_s1] sm:$0xff]  ;;  %v231_v17 = vld [vmem:[%s608_s30 + $0x18] sm:$0xff]  ;;  %v315_v19 = vld [vmem:[%s690_s3 + $0x50] sm:$0xff] }
  0x11   : > { %v228_v16 = vld [vmem:[%s608_s30] sm:$0xff]  ;;  %v316_v18 = vld [vmem:[%s690_s3 + $0x58] sm:$0xff]  ;;  %v314_v20 = vld [vmem:[%s690_s3 + $0x48] sm:$0xff] }
  0x12   : > { %259 = vmatpush.msra.mxu0 %v248_v3  ;;  %474 = vmatpush.msra.mxu2 %v248_v3  ;;  %v313_v21 = vld [vmem:[%s690_s3 + $0x40] sm:$0xff]  ;;  %v229_v22 = vld [vmem:[%s608_s30 + $0x8] sm:$0xff]  ;;  %v312_v24 = vld [vmem:[%s690_s3 + $0x38] sm:$0xff] }
  0x13   : > { %350 = vmatpush.msra.mxu1 %v316_v18  ;;  %487 = vmatpush.msra.mxu3 %v316_v18  ;;  %v232_v23 = vld [vmem:[%s608_s30 + $0x20] sm:$0xff]  ;;  %v311_v25 = vld [vmem:[%s690_s3 + $0x30] sm:$0xff]  ;;  %v310_v26 = vld [vmem:[%s690_s3 + $0x28] sm:$0xff] }
  0x14   : > { %260 = vmatpush.msra.mxu0 %v247_v4  ;;  %475 = vmatpush.msra.mxu2 %v247_v4  ;;  %v309_v27 = vld [vmem:[%s690_s3 + $0x20] sm:$0xff]  ;;  %v230_v28 = vld [vmem:[%s608_s30 + $0x10] sm:$0xff]  ;;  %v233_v29 = vld [vmem:[%s608_s30 + $0x28] sm:$0xff] }
  0x15   : > { %351 = vmatpush.msra.mxu1 %v315_v19  ;;  %488 = vmatpush.msra.mxu3 %v315_v19  ;;  %v308_v30 = vld [vmem:[%s690_s3 + $0x18] sm:$0xff]  ;;  %v234_v31 = vld [vmem:[%s608_s30 + $0x30] sm:$0xff]  ;;  %v306_v34 = vld [vmem:[%s690_s3 + $0x8] sm:$0xff] }
  0x16   : > { %261 = vmatpush.msra.mxu0 %v246_v5  ;;  %476 = vmatpush.msra.mxu2 %v246_v5  ;;  %v235_v32 = vld [vmem:[%s608_s30 + $0x38] sm:$0xff]  ;;  %v307_v33 = vld [vmem:[%s690_s3 + $0x10] sm:$0xff]  ;;  %v305_v35 = vld [vmem:[%s690_s3] sm:$0xff] }
  0x17   : > { %352 = vmatpush.msra.mxu1 %v314_v20  ;;  %489 = vmatpush.msra.mxu3 %v314_v20  ;;  %v507_v36 = vld [vmem:[%s689_s2] ss:$0 sm:$0xff] }
  0x18   : > { %262 = vmatpush.msra.mxu0 %v245_v6  ;;  %477 = vmatpush.msra.mxu2 %v245_v6  ;;  %v508_v61 = vld [vmem:[%s691_s4] ss:$0 sm:$0xff] }
  0x19   : > { %353 = vmatpush.msra.mxu1 %v313_v21  ;;  %490 = vmatpush.msra.mxu3 %v313_v21 }
  0x1a   : > { %263 = vmatpush.msra.mxu0 %v244_v7  ;;  %478 = vmatpush.msra.mxu2 %v244_v7 }
  0x1b   : > { %354 = vmatpush.msra.mxu1 %v312_v24  ;;  %491 = vmatpush.msra.mxu3 %v312_v24 }
  0x1c   : > { %264 = vmatpush.msra.mxu0 %v243_v8  ;;  %479 = vmatpush.msra.mxu2 %v243_v8 }
  0x1d   : > { %355 = vmatpush.msra.mxu1 %v311_v25  ;;  %492 = vmatpush.msra.mxu3 %v311_v25 }
  0x1e   : > { %265 = vmatpush.msra.mxu0 %v242_v9  ;;  %480 = vmatpush.msra.mxu2 %v242_v9 }
  0x1f   : > { %356 = vmatpush.msra.mxu1 %v310_v26  ;;  %493 = vmatpush.msra.mxu3 %v310_v26 }
  0x20   : > { %266 = vmatpush.msra.mxu0 %v241_v10  ;;  %481 = vmatpush.msra.mxu2 %v241_v10 }
  0x21   : > { %357 = vmatpush.msra.mxu1 %v309_v27  ;;  %494 = vmatpush.msra.mxu3 %v309_v27 }
  0x22   : > { %267 = vmatpush.msra.mxu0 %v240_v11  ;;  %482 = vmatpush.msra.mxu2 %v240_v11 }
  0x23   : > { %358 = vmatpush.msra.mxu1 %v308_v30  ;;  %495 = vmatpush.msra.mxu3 %v308_v30 }
  0x24   : > { %268 = vmatpush.msra.mxu0 %v239_v12  ;;  %483 = vmatpush.msra.mxu2 %v239_v12 }
  0x25   : > { %359 = vmatpush.msra.mxu1 %v307_v33  ;;  %496 = vmatpush.msra.mxu3 %v307_v33 }
  0x26   : > { %269 = vmatpush.msra.mxu0 %v238_v13  ;;  %484 = vmatpush.msra.mxu2 %v238_v13 }
  0x27   : > { %360 = vmatpush.msra.mxu1 %v306_v34  ;;  %497 = vmatpush.msra.mxu3 %v306_v34 }
  0x28   : > { %270 = vmatpush.msra.mxu0 %v237_v14  ;;  %485 = vmatpush.msra.mxu2 %v237_v14 }
  0x29   : > { %361 = vmatpush.msra.mxu1 %v305_v35  ;;  %498 = vmatpush.msra.mxu3 %v305_v35 }
  0x2a   : > { %271 = vmatpush.msra.mxu0 %v236_v15  ;;  %486 = vmatpush.msra.mxu2 %v236_v15 }
  0x2b   : > { %272 = vmatmul.f32.vlgmr.msra.gmra.mxu0 %v228_v16  ;;  %281 = vmatmul.f32.vlgmr.msra.gmra.mxu2 %v231_v17 }
  0x33   : > { %275 = vmatmul.f32.gmra.mxu0 %v229_v22  ;;  %284 = vmatmul.f32.gmra.mxu2 %v232_v23 }
  0x3b   : > { %278 = vmatmul.f32.gmra.mxu0 %v230_v28  ;;  %287 = vmatmul.f32.gmra.mxu2 %v233_v29 }
  0x43   : > { %290 = vmatmul.f32.gmra.mxu2 %v234_v31 }
  0x4b   : > { %293 = vmatmul.f32.gmra.mxu2 %v235_v32 }
  0xa8   : > { %v273_v37 = vpop.f32.mrf.mxu0 }
  0xa9   : > { %v274_v38 = vadd.f32 %v507_v36, %v273_v37 }
  0xab   : > { %v297_v39 = vmax.f32 %v274_v38, 0.0 }
  0xad   : > { %461 = vmatmul.msk.f32.vlgmr.msra.gmra.mxu1 %vm321_vm0, %v297_v39 }
  0xae   : > { %v282_v40 = vpop.f32.mrf.mxu2 }
  0xaf   : > { %v283_v49 = vadd.f32 %v507_v36, %v282_v40 }
  0xb0   : > { %v276_v41 = vpop.f32.mrf.mxu0 }
  0xb1   : > { %v277_v42 = vadd.f32 %v507_v36, %v276_v41  ;;  %v300_v52 = vmax.f32 %v283_v49, 0.0 }
  0xb3   : > { %v298_v43 = vmax.f32 %v277_v42, 0.0 }
  0xb5   : > { %462 = vmatmul.msk.f32.gmra.mxu1 %vm321_vm0, %v298_v43 }
  0xb6   : > { %v285_v44 = vpop.f32.mrf.mxu2 }
  0xb7   : > { %v286_v54 = vadd.f32 %v507_v36, %v285_v44 }
  0xb8   : > { %v279_v45 = vpop.f32.mrf.mxu0 }
  0xb9   : > { %v280_v46 = vadd.f32 %v507_v36, %v279_v45  ;;  %v301_v57 = vmax.f32 %v286_v54, 0.0 }
  0xbb   : > { %v299_v47 = vmax.f32 %v280_v46, 0.0 }
  0xbd   : > { %463 = vmatmul.msk.f32.gmra.mxu1 %vm321_vm0, %v299_v47 }
  0xbe   : > { %v288_v48 = vpop.f32.mrf.mxu2 }
  0xbf   : > { %v289_v50 = vadd.f32 %v507_v36, %v288_v48 }
  0xc1   : > { %v302_v51 = vmax.f32 %v289_v50, 0.0 }
  0xc3   : > { %466 = vmatmul.msk.f32.vlgmr.msra.gmra.mxu3 %vm321_vm0, %v302_v51 }
  0xc5   : > { %464 = vmatmul.msk.f32.gmra.mxu1 %vm321_vm0, %v300_v52 }
  0xc6   : > { %v291_v53 = vpop.f32.mrf.mxu2 }
  0xc7   : > { %v292_v55 = vadd.f32 %v507_v36, %v291_v53 }
  0xc9   : > { %v303_v56 = vmax.f32 %v292_v55, 0.0 }
  0xcb   : > { %467 = vmatmul.msk.f32.gmra.mxu3 %vm321_vm0, %v303_v56 }
  0xcd   : > { %465 = vmatmul.msk.f32.gmra.mxu1 %vm321_vm0, %v301_v57 }
  0xce   : > { %v294_v58 = vpop.f32.mrf.mxu2 }
  0xcf   : > { %v295_v59 = vadd.f32 %v507_v36, %v294_v58 }
  0xd1   : > { %v304_v60 = vmax.f32 %v295_v59, 0.0 }
  0xd3   : > { %468 = vmatmul.msk.f32.gmra.mxu3 %vm321_vm0, %v304_v60 }
 0x12a   : > { %v363_v62 = vpop.f32.mrf.mxu1 }
 0x12b   : > { %v364_v63 = vadd.f32 %v508_v61, %v363_v62 }
 0x12d   : > { %388 = vst.msk [vmem:[%s226_s17] sm:$0xff] %vm387_vm1, %v364_v63 }
 0x132   : > { %v366_v0 = vpop.f32.mrf.mxu1 }
 0x133   : > { %v367_v1 = vadd.f32 %v508_v61, %v366_v0 }
 0x135   : > { %389 = vst.msk [vmem:[%s226_s17 + $0x8] sm:$0xff] %vm387_vm1, %v367_v1 }
 0x13a   : > { %v369_v2 = vpop.f32.mrf.mxu1 }
 0x13b   : > { %v370_v3 = vadd.f32 %v508_v61, %v369_v2 }
 0x13d   : > { %390 = vst.msk [vmem:[%s226_s17 + $0x10] sm:$0xff] %vm387_vm1, %v370_v3 }
 0x142   : > { %v372_v4 = vpop.f32.mrf.mxu1 }
 0x143   : > { %v373_v5 = vadd.f32 %v508_v61, %v372_v4 }
 0x145   : > { %391 = vst.msk [vmem:[%s226_s17 + $0x18] sm:$0xff] %vm387_vm1, %v373_v5 }
 0x146   : > { %v378_v6 = vpop.f32.mrf.mxu3 }
 0x147   : > { %v379_v7 = vadd.f32 %v508_v61, %v378_v6 }
 0x149   : > { %393 = vst.msk [vmem:[%s226_s17 + $0x28] sm:$0xff] %vm387_vm1, %v379_v7 }
 0x14a   : > { %v375_v8 = vpop.f32.mrf.mxu1 }
 0x14b   : > { %v376_v9 = vadd.f32 %v508_v61, %v375_v8 }
 0x14d   : > { %392 = vst.msk [vmem:[%s226_s17 + $0x20] sm:$0xff] %vm387_vm1, %v376_v9 }
 0x14e   : > { %v381_v10 = vpop.f32.mrf.mxu3 }
 0x14f   : > { %v382_v11 = vadd.f32 %v508_v61, %v381_v10 }
 0x151   : > { %394 = vst.msk [vmem:[%s226_s17 + $0x30] sm:$0xff] %vm387_vm1, %v382_v11 }
 0x156   : > { %v384_v12 = vpop.f32.mrf.mxu3 }
 0x157   : > { %v385_v13 = vadd.f32 %v508_v61, %v384_v12 }
 0x159   : > { %395 = vst.msk [vmem:[%s226_s17 + $0x38] sm:$0xff] %vm387_vm1, %v385_v13 }
 0x15a PF: > { %s15_s18 = sadd.s32 1, %s515_s18  }
 0x15b   : > { %p12_p4 = scmp.ge.s32.totalorder %s15_s18, 4  }
 0x15d   :  { %14 = sbr.rel (!%p12_p4) target bundleno = 1 (0x1), region = 70 }

</bundles_post_ra>
